<compile_context>
chip_gen: v6e
topology: v6e:2x2x1
jax: 0.10.0
libtpu: 0.0.40
codegen_flags: <defaults>
</compile_context>

<pallas_src>
import functools

import jax
import jax.numpy as jnp
from jax.experimental import pallas as pl
from jax.experimental.pallas import tpu as pltpu


def actor_kernel(x_ref, w1_ref, b1_ref, w2_ref, b2_ref, w3_ref, b3_ref, o_ref):
    """relu(x@W1+b1) -> relu(@W2+b2) -> @W3+b3 -> softmax over last dim."""
    # x arrives as f32 straight from HBM; cast to bf16 on the VPU so all three
    # matmuls take the bf16 MXU path with f32 accumulation.
    x = x_ref[...].astype(jnp.bfloat16)                                    # (bb, in)
    h1 = jnp.dot(x, w1_ref[...], preferred_element_type=jnp.float32) + b1_ref[...]
    h1 = jnp.maximum(h1, 0.0).astype(jnp.bfloat16)                         # (bb, 128)
    h2 = jnp.dot(h1, w2_ref[...], preferred_element_type=jnp.float32) + b2_ref[...]
    h2 = jnp.maximum(h2, 0.0).astype(jnp.bfloat16)                         # (bb, 64)
    logits = jnp.dot(h2, w3_ref[...], preferred_element_type=jnp.float32) + b3_ref[...]
    # numerically stable softmax over the true (unpadded) out_dim lanes
    m = jnp.max(logits, axis=-1, keepdims=True)
    e = jnp.exp(logits - m)
    denom = jnp.sum(e, axis=-1, keepdims=True)
    o_ref[...] = (e / denom).astype(o_ref.dtype)


def prepare_actor_params(params):
    """One-time parameter prep, outside the per-call path.

    Casts weights to bf16 and reshapes biases to (1, N) f32 so the jitted
    forward contains only the pallas_call (no per-call cast/pad HLO ops).
    """
    w1, b1, w2, b2, w3, b3 = params
    return (
        w1.astype(jnp.bfloat16), jnp.asarray(b1, jnp.float32).reshape(1, -1),
        w2.astype(jnp.bfloat16), jnp.asarray(b2, jnp.float32).reshape(1, -1),
        w3.astype(jnp.bfloat16), jnp.asarray(b3, jnp.float32).reshape(1, -1),
    )


@functools.partial(jax.jit, static_argnames=("block_b",))
def actor_forward(x, prepared_params, block_b=1024):
    """x: f32 [B, in_dim]; prepared_params from prepare_actor_params()."""
    w1, b1, w2, b2, w3, b3 = prepared_params
    B, in_dim = x.shape
    out_dim = w3.shape[1]

    # Batch tiling: one big tile (grid=1) whenever the batch fits block_b;
    # otherwise tiles of block_b rows (multiple of 16 for bf16 sublane
    # packing), ragged tail handled by Pallas partial-tile masking.
    if B <= block_b:
        bb = B                       # block == full array dim: no (8,128) constraint
    else:
        bb = max(16, (block_b // 16) * 16)
    grid = (pl.cdiv(B, bb),)

    # x / out tiled over the batch; parameters resident (constant index_map).
    in_specs = [
        pl.BlockSpec((bb, in_dim), lambda i: (i, 0)),     # x   f32 (bb, in)
        pl.BlockSpec(w1.shape, lambda i: (0, 0)),         # W1  bf16 (in, 128)
        pl.BlockSpec(b1.shape, lambda i: (0, 0)),         # b1  f32  (1, 128)
        pl.BlockSpec(w2.shape, lambda i: (0, 0)),         # W2  bf16 (128, 64)
        pl.BlockSpec(b2.shape, lambda i: (0, 0)),         # b2  f32  (1, 64)
        pl.BlockSpec(w3.shape, lambda i: (0, 0)),         # W3  bf16 (64, out)
        pl.BlockSpec(b3.shape, lambda i: (0, 0)),         # b3  f32  (1, out)
    ]
    out_specs = pl.BlockSpec((bb, out_dim), lambda i: (i, 0))

    return pl.pallas_call(
        actor_kernel,
        out_shape=jax.ShapeDtypeStruct((B, out_dim), jnp.float32),
        grid_spec=pl.GridSpec(grid=grid, in_specs=in_specs, out_specs=out_specs),
        compiler_params=pltpu.CompilerParams(
            dimension_semantics=("parallel",),   # megacore sharding on v7x when grid > 1
        ),
    )(x, w1, b1, w2, b2, w3, b3)


def init_actor_params(key, input_dim, output_dim):
    """Deterministic init mimicking nn.Linear's uniform(-1/sqrt(fan_in), 1/sqrt(fan_in))."""
    dims = [(input_dim, 128), (128, 64), (64, output_dim)]
    params = []
    for fan_in, fan_out in dims:
        key, kw, kb = jax.random.split(key, 3)
        bound = 1.0 / jnp.sqrt(float(fan_in))
        w = jax.random.uniform(kw, (fan_in, fan_out), jnp.float32, -bound, bound)
        b = jax.random.uniform(kb, (fan_out,), jnp.float32, -bound, bound)
        params.extend([w, b])
    return tuple(params)


def actor_reference(x, params):
    """Pure-JAX (f32) reference of the PyTorch forward for validation."""
    w1, b1, w2, b2, w3, b3 = params
    h1 = jax.nn.relu(x @ w1 + b1)
    h2 = jax.nn.relu(h1 @ w2 + b2)
    return jax.nn.softmax(h2 @ w3 + b3, axis=-1)


if __name__ == "__main__":
    key = jax.random.PRNGKey(0)
    key, kx, kp = jax.random.split(key, 3)

    batch = 256
    input_dim = 32
    output_dim = 16

    x = jax.random.normal(kx, (batch, input_dim), dtype=jnp.float32)
    params_f32 = init_actor_params(kp, input_dim, output_dim)
    params = prepare_actor_params(params_f32)     # one-time prep, outside the hot path

    # batch <= block_b -> single tile, grid=1 (best for v5e/v6e and small-B v7x)
    out = jax.block_until_ready(actor_forward(x, params))

    ref = actor_reference(x, params_f32)
    assert out.shape == (batch, output_dim)
    # exact softmax normalization (f32 epilogue, exact divide)
    assert jnp.allclose(jnp.sum(out, axis=-1), 1.0, atol=1e-3)
    # bf16 matmuls vs f32 reference -> relaxed tolerance
    assert jnp.allclose(out, ref, atol=2e-2, rtol=0.0)

    print("KERNEL_OK")
</pallas_src>

<mosaic_0001>
module attributes {stable_mosaic.version = 11 : i64} {
  func.func @actor_kernel(%arg0: i32, %arg1: memref<256x32xf32, #tpu.memory_space<vmem>>, %arg2: memref<32x128xbf16, #tpu.memory_space<vmem>>, %arg3: memref<1x128xf32, #tpu.memory_space<vmem>>, %arg4: memref<128x64xbf16, #tpu.memory_space<vmem>>, %arg5: memref<1x64xf32, #tpu.memory_space<vmem>>, %arg6: memref<64x16xbf16, #tpu.memory_space<vmem>>, %arg7: memref<1x16xf32, #tpu.memory_space<vmem>>, %arg8: memref<256x16xf32, #tpu.memory_space<vmem>>) attributes {dimension_semantics = [#tpu.dimension_semantics<parallel>], iteration_bounds = array<i64: 1>, scalar_prefetch = 0 : i64, scratch_operands = 0 : i64, tpu.core_type = #tpu.core_type<tc>, window_params = [{transform_indices = @transform_0, window_bounds = array<i64: 256, 32>}, {pipeline_mode = #tpu.pipeline_mode<synchronous>, transform_indices = @transform_1, window_bounds = array<i64: 32, 128>}, {pipeline_mode = #tpu.pipeline_mode<synchronous>, transform_indices = @transform_2, window_bounds = array<i64: 1, 128>}, {pipeline_mode = #tpu.pipeline_mode<synchronous>, transform_indices = @transform_3, window_bounds = array<i64: 128, 64>}, {pipeline_mode = #tpu.pipeline_mode<synchronous>, transform_indices = @transform_4, window_bounds = array<i64: 1, 64>}, {pipeline_mode = #tpu.pipeline_mode<synchronous>, transform_indices = @transform_5, window_bounds = array<i64: 64, 16>}, {pipeline_mode = #tpu.pipeline_mode<synchronous>, transform_indices = @transform_6, window_bounds = array<i64: 1, 16>}, {transform_indices = @transform_7, window_bounds = array<i64: 256, 16>}]} {
    %c0 = arith.constant 0 : index
    %c0_0 = arith.constant 0 : index
    %0 = vector.load %arg1[%c0, %c0_0] : memref<256x32xf32, #tpu.memory_space<vmem>>, vector<256x32xf32>
    %1 = arith.truncf %0 : vector<256x32xf32> to vector<256x32xbf16>
    %c0_1 = arith.constant 0 : index
    %c0_2 = arith.constant 0 : index
    %2 = vector.load %arg2[%c0_1, %c0_2] : memref<32x128xbf16, #tpu.memory_space<vmem>>, vector<32x128xbf16>
    %cst = arith.constant dense<0.000000e+00> : vector<256x128xf32>
    %3 = tpu.matmul %1, %2, %cst {dimension_numbers = #tpu.dot_dimension_numbers<[1], [0], [0], [1], [0, 0, 1, 1], [], []>} : vector<256x32xbf16>, vector<32x128xbf16>, vector<256x128xf32> -> vector<256x128xf32>
    %c0_3 = arith.constant 0 : index
    %c0_4 = arith.constant 0 : index
    %4 = vector.load %arg3[%c0_3, %c0_4] : memref<1x128xf32, #tpu.memory_space<vmem>>, vector<1x128xf32>
    %5 = vector.broadcast %4 : vector<1x128xf32> to vector<256x128xf32>
    %6 = arith.addf %3, %5 : vector<256x128xf32>
    %cst_5 = arith.constant 0.000000e+00 : f32
    %7 = vector.broadcast %cst_5 : f32 to vector<256x128xf32>
    %8 = arith.maximumf %6, %7 : vector<256x128xf32>
    %9 = arith.truncf %8 : vector<256x128xf32> to vector<256x128xbf16>
    %c0_6 = arith.constant 0 : index
    %c0_7 = arith.constant 0 : index
    %10 = vector.load %arg4[%c0_6, %c0_7] : memref<128x64xbf16, #tpu.memory_space<vmem>>, vector<128x64xbf16>
    %cst_8 = arith.constant dense<0.000000e+00> : vector<256x64xf32>
    %11 = tpu.matmul %9, %10, %cst_8 {dimension_numbers = #tpu.dot_dimension_numbers<[1], [0], [0], [1], [0, 0, 1, 1], [], []>} : vector<256x128xbf16>, vector<128x64xbf16>, vector<256x64xf32> -> vector<256x64xf32>
    %c0_9 = arith.constant 0 : index
    %c0_10 = arith.constant 0 : index
    %12 = vector.load %arg5[%c0_9, %c0_10] : memref<1x64xf32, #tpu.memory_space<vmem>>, vector<1x64xf32>
    %13 = vector.broadcast %12 : vector<1x64xf32> to vector<256x64xf32>
    %14 = arith.addf %11, %13 : vector<256x64xf32>
    %cst_11 = arith.constant 0.000000e+00 : f32
    %15 = vector.broadcast %cst_11 : f32 to vector<256x64xf32>
    %16 = arith.maximumf %14, %15 : vector<256x64xf32>
    %17 = arith.truncf %16 : vector<256x64xf32> to vector<256x64xbf16>
    %c0_12 = arith.constant 0 : index
    %c0_13 = arith.constant 0 : index
    %18 = vector.load %arg6[%c0_12, %c0_13] : memref<64x16xbf16, #tpu.memory_space<vmem>>, vector<64x16xbf16>
    %cst_14 = arith.constant dense<0.000000e+00> : vector<256x16xf32>
    %19 = tpu.matmul %17, %18, %cst_14 {dimension_numbers = #tpu.dot_dimension_numbers<[1], [0], [0], [1], [0, 0, 1, 1], [], []>} : vector<256x64xbf16>, vector<64x16xbf16>, vector<256x16xf32> -> vector<256x16xf32>
    %c0_15 = arith.constant 0 : index
    %c0_16 = arith.constant 0 : index
    %20 = vector.load %arg7[%c0_15, %c0_16] : memref<1x16xf32, #tpu.memory_space<vmem>>, vector<1x16xf32>
    %21 = vector.broadcast %20 : vector<1x16xf32> to vector<256x16xf32>
    %22 = arith.addf %19, %21 : vector<256x16xf32>
    %cst_17 = arith.constant dense<0xFF800000> : vector<256xf32>
    %23 = vector.multi_reduction <maximumf>, %22, %cst_17 [1] : vector<256x16xf32> to vector<256xf32>
    %24 = vector.shape_cast %23 : vector<256xf32> to vector<256x1xf32>
    %25 = vector.broadcast %24 : vector<256x1xf32> to vector<256x16xf32>
    %26 = arith.subf %22, %25 : vector<256x16xf32>
    %27 = math.exp %26 : vector<256x16xf32>
    %cst_18 = arith.constant dense<0.000000e+00> : vector<256xf32>
    %28 = vector.multi_reduction <add>, %27, %cst_18 [1] : vector<256x16xf32> to vector<256xf32>
    %29 = vector.shape_cast %28 : vector<256xf32> to vector<256x1xf32>
    %30 = vector.broadcast %29 : vector<256x1xf32> to vector<256x16xf32>
    %31 = arith.divf %27, %30 : vector<256x16xf32>
    %c0_19 = arith.constant 0 : index
    %c0_20 = arith.constant 0 : index
    %32 = vector.load %arg8[%c0_19, %c0_20] : memref<256x16xf32, #tpu.memory_space<vmem>>, vector<256x16xf32>
    tpu.vector_store %arg8[%c0_19, %c0_20], %31 {strides = array<i32>} : memref<256x16xf32, #tpu.memory_space<vmem>>, vector<256x16xf32>,
    return
  }
  func.func @transform_0(%arg0: i32) -> (i32, i32) {
    %c0_i32 = arith.constant 0 : i32
    %c0_i32_0 = arith.constant 0 : i32
    return %arg0, %c0_i32 : i32, i32
  }
  func.func @transform_1(%arg0: i32) -> (i32, i32) {
    %c0_i32 = arith.constant 0 : i32
    %c0_i32_0 = arith.constant 0 : i32
    %c0_i32_1 = arith.constant 0 : i32
    return %c0_i32, %c0_i32_0 : i32, i32
  }
  func.func @transform_2(%arg0: i32) -> (i32, i32) {
    %c0_i32 = arith.constant 0 : i32
    %c0_i32_0 = arith.constant 0 : i32
    %c0_i32_1 = arith.constant 0 : i32
    return %c0_i32, %c0_i32_0 : i32, i32
  }
  func.func @transform_3(%arg0: i32) -> (i32, i32) {
    %c0_i32 = arith.constant 0 : i32
    %c0_i32_0 = arith.constant 0 : i32
    %c0_i32_1 = arith.constant 0 : i32
    return %c0_i32, %c0_i32_0 : i32, i32
  }
  func.func @transform_4(%arg0: i32) -> (i32, i32) {
    %c0_i32 = arith.constant 0 : i32
    %c0_i32_0 = arith.constant 0 : i32
    %c0_i32_1 = arith.constant 0 : i32
    return %c0_i32, %c0_i32_0 : i32, i32
  }
  func.func @transform_5(%arg0: i32) -> (i32, i32) {
    %c0_i32 = arith.constant 0 : i32
    %c0_i32_0 = arith.constant 0 : i32
    %c0_i32_1 = arith.constant 0 : i32
    return %c0_i32, %c0_i32_0 : i32, i32
  }
  func.func @transform_6(%arg0: i32) -> (i32, i32) {
    %c0_i32 = arith.constant 0 : i32
    %c0_i32_0 = arith.constant 0 : i32
    %c0_i32_1 = arith.constant 0 : i32
    return %c0_i32, %c0_i32_0 : i32, i32
  }
  func.func @transform_7(%arg0: i32) -> (i32, i32) {
    %c0_i32 = arith.constant 0 : i32
    %c0_i32_0 = arith.constant 0 : i32
    return %arg0, %c0_i32 : i32, i32
  }
}

</mosaic_0001>

<bundles_post_ra>
// kernel: actor_forward.1
= control target key start
LH: loop header
LB: loop body
LE: loop exit
PB: predicated region body
PF: predicated region fallthrough
CT: control target
= control target key end

     0   :  { %vm98_vm0 = vcmask 261120   ;;  %vm675_vm1 = vcmask 523264   ;;  %vm885_vm2 = vcmask 130048   ;;  %s2439_s1 = inlined_call_operand.vmem [shape: bf16[32,128], index: 1, kind: input, shape index: {}]   ;;  %s2440_s0 = inlined_call_operand.vmem [shape: f32[256,32], index: 0, kind: input, shape index: {}]   ;;  %s2441_s3 = inlined_call_operand.vmem [shape: bf16[128,64], index: 3, kind: input, shape index: {}]   ;;  %s2442_s5 = inlined_call_operand.vmem [shape: bf16[64,16], index: 5, kind: input, shape index: {}]   ;;  %s2443_s2 = inlined_call_operand.vmem [shape: f32[1,128], index: 2, kind: input, shape index: {}]   ;;  %s2444_s4 = inlined_call_operand.vmem [shape: f32[1,64], index: 4, kind: input, shape index: {}]   ;;  %s2445_s6 = inlined_call_operand.vmem [shape: f32[1,16], index: 6, kind: input, shape index: {}]   ;;  %s2446_s7 = inlined_call_operand.vmem [shape: f32[256,16], index: 7, kind: output, shape index: {}]  }
   0x1   :  { %v1513_v0 = vld [vmem:[%s2439_s1 + $0x8] sm:$0xff]   ;;  %v1514_v1 = vld [vmem:[%s2439_s1] sm:$0xff]   ;;  %v29_v5 = vld [vmem:[%s2440_s0 + $0x10] sm:$0xff] }
   0x2   :  { %1385 = vmatprep.subr.bf16.mxu0 %v1513_v0  ;;  %v27_v2 = vld [vmem:[%s2440_s0] sm:$0xff]  ;;  %v28_v3 = vld [vmem:[%s2440_s0 + $0x8] sm:$0xff]  ;;  %1509 = vmatprep.subr.bf16.mxu1 %v1513_v0  ;;  %v30_v6 = vld [vmem:[%s2440_s0 + $0x18] sm:$0xff] }
   0x3   :  { %1386 = vmatpush3.bf16.msra.mxu0 %v1513_v0  ;;  %v59_v4 = vpack.c.bf16 %v28_v3, %v27_v2  ;;  %1511 = vmatpush3.bf16.msra.mxu1 %v1513_v0  ;;  %v31_v7 = vld [vmem:[%s2440_s0 + $0x20] sm:$0xff]  ;;  %v32_v8 = vld [vmem:[%s2440_s0 + $0x28] sm:$0xff]  ;;  %v60_v9 = vpack.c.bf16 %v30_v6, %v29_v5  ;;  %v45_v14 = vld [vmem:[%s2440_s0 + $0x90] sm:$0xff] }
   0x4   :  { %1387 = vmatprep.subr.bf16.mxu0 %v1514_v1  ;;  %1510 = vmatprep.subr.bf16.mxu1 %v1514_v1  ;;  %v61_v10 = vpack.c.bf16 %v32_v8, %v31_v7  ;;  %v43_v11 = vld [vmem:[%s2440_s0 + $0x80] sm:$0xff]  ;;  %v44_v12 = vld [vmem:[%s2440_s0 + $0x88] sm:$0xff]  ;;  %v46_v15 = vld [vmem:[%s2440_s0 + $0x98] sm:$0xff] }
   0x5   :  { %1389 = vmatprep.mubr.msk.bf16.mxu0 %vm98_vm0, %v59_v4  ;;  %v67_v13 = vpack.c.bf16 %v44_v12, %v43_v11  ;;  %v47_v16 = vld [vmem:[%s2440_s0 + $0xa0] sm:$0xff]  ;;  %v68_v17 = vpack.c.bf16 %v46_v15, %v45_v14  ;;  %v48_v18 = vld [vmem:[%s2440_s0 + $0xa8] sm:$0xff]  ;;  %v33_v19 = vld [vmem:[%s2440_s0 + $0x30] sm:$0xff] }
   0x6   :  { %v34_v20 = vld [vmem:[%s2440_s0 + $0x38] sm:$0xff]  ;;  %v35_v21 = vld [vmem:[%s2440_s0 + $0x40] sm:$0xff]  ;;  %v69_v22 = vpack.c.bf16 %v48_v18, %v47_v16  ;;  %v36_v23 = vld [vmem:[%s2440_s0 + $0x48] sm:$0xff] }
   0x7   :  { %1388 = vmatpush3.bf16.msra.mxu0 %v1514_v1  ;;  %1512 = vmatpush3.bf16.msra.mxu1 %v1514_v1  ;;  %v49_v24 = vld [vmem:[%s2440_s0 + $0xb0] sm:$0xff]  ;;  %v50_v25 = vld [vmem:[%s2440_s0 + $0xb8] sm:$0xff]  ;;  %v51_v26 = vld [vmem:[%s2440_s0 + $0xc0] sm:$0xff]  ;;  %v62_v29 = vpack.c.bf16 %v34_v20, %v33_v19  ;;  %v63_v31 = vpack.c.bf16 %v36_v23, %v35_v21 }
   0x8   :  { %1405 = vmatprep.mubr.msk.bf16.mxu1 %vm98_vm0, %v67_v13  ;;  %v52_v27 = vld [vmem:[%s2440_s0 + $0xc8] sm:$0xff]  ;;  %v1515_v28 = vld [vmem:[%s2441_s3 + $0x38] sm:$0xff]   ;;  %v1516_v30 = vld [vmem:[%s2441_s3 + $0x30] sm:$0xff]   ;;  %v70_v32 = vpack.c.bf16 %v50_v25, %v49_v24 }
   0x9   :  { %1421 = vmatprep.subr.bf16.mxu1 %v1515_v28  ;;  %v71_v33 = vpack.c.bf16 %v52_v27, %v51_v26  ;;  %v37_v34 = vld [vmem:[%s2440_s0 + $0x50] sm:$0xff]  ;;  %v38_v35 = vld [vmem:[%s2440_s0 + $0x58] sm:$0xff]  ;;  %v1517_v36 = vld [vmem:[%s2441_s3 + $0x28] sm:$0xff]  }
   0xa   :  { %1390 = vmatmul.mubr.msk.bf16.vlgmr.msra.gmra.mxu0 %vm98_vm0, %v60_v9  ;;  %1406 = vmatmul.mubr.msk.bf16.vlgmr.msra.gmra.mxu1 %vm98_vm0, %v68_v17  ;;  %v39_v37 = vld [vmem:[%s2440_s0 + $0x60] sm:$0xff]  ;;  %v40_v38 = vld [vmem:[%s2440_s0 + $0x68] sm:$0xff]  ;;  %v53_v39 = vld [vmem:[%s2440_s0 + $0xd0] sm:$0xff]  ;;  %v64_v44 = vpack.c.bf16 %v38_v35, %v37_v34 }
   0xb   :  { %1393 = vmatprep.mubr.msk.bf16.mxu0 %vm98_vm0, %v61_v10  ;;  %1409 = vmatprep.mubr.msk.bf16.mxu1 %vm98_vm0, %v69_v22  ;;  %v54_v40 = vld [vmem:[%s2440_s0 + $0xd8] sm:$0xff]  ;;  %v55_v41 = vld [vmem:[%s2440_s0 + $0xe0] sm:$0xff]  ;;  %v56_v42 = vld [vmem:[%s2440_s0 + $0xe8] sm:$0xff]  ;;  %v65_v45 = vpack.c.bf16 %v40_v38, %v39_v37 }
   0xc   :  { %1422 = vmatpush3.bf16.msra.mxu1 %v1515_v28  ;;  %v1518_v43 = vld [vmem:[%s2441_s3 + $0x20] sm:$0xff]   ;;  %v72_v46 = vpack.c.bf16 %v54_v40, %v53_v39  ;;  %v73_v47 = vpack.c.bf16 %v56_v42, %v55_v41  ;;  %v1519_v48 = vld [vmem:[%s2441_s3 + $0x18] sm:$0xff]   ;;  %v41_v49 = vld [vmem:[%s2440_s0 + $0x70] sm:$0xff] }
   0xd   :  { %1423 = vmatprep.subr.bf16.mxu1 %v1516_v30  ;;  %v42_v50 = vld [vmem:[%s2440_s0 + $0x78] sm:$0xff]  ;;  %v57_v51 = vld [vmem:[%s2440_s0 + $0xf0] sm:$0xff]  ;;  %v1521_v56 = vld [vmem:[%s2441_s3 + $0x8] sm:$0xff]  }
   0xe   :  { %v58_v52 = vld [vmem:[%s2440_s0 + $0xf8] sm:$0xff]  ;;  %v66_v53 = vpack.c.bf16 %v42_v50, %v41_v49  ;;  %v1520_v55 = vld [vmem:[%s2441_s3 + $0x10] sm:$0xff]   ;;  %v1522_v57 = vld [vmem:[%s2441_s3] sm:$0xff]  }
   0xf   :  { %v74_v54 = vpack.c.bf16 %v58_v52, %v57_v51  ;;  %v1523_v58 = vld [vmem:[%s2442_s5 + $0x18] sm:$0xff]   ;;  %v1524_v59 = vld [vmem:[%s2442_s5 + $0x10] sm:$0xff]   ;;  %v1525_v60 = vld [vmem:[%s2442_s5 + $0x8] sm:$0xff]  }
  0x10   :  { %1424 = vmatpush3.bf16.msra.mxu1 %v1516_v30  ;;  %1469 = vmatprep.subr.bf16.mxu0 %v1523_v58  ;;  %v1851_v0 = vld [vmem:[%s2443_s2] ss:$0 sm:$0xff] }
  0x11   :  { %1425 = vmatprep.subr.bf16.mxu1 %v1517_v36  ;;  %1470 = vmatpush3.bf16.msra.mxu0 %v1523_v58 }
  0x12   :  { %1394 = vmatmul.mubr.msk.bf16.gmra.mxu0 %vm98_vm0, %v62_v29  ;;  %1410 = vmatmul.mubr.msk.bf16.gmra.mxu1 %vm98_vm0, %v70_v32 }
  0x13   :  { %1397 = vmatprep.mubr.msk.bf16.mxu0 %vm98_vm0, %v63_v31  ;;  %1413 = vmatprep.mubr.msk.bf16.mxu1 %vm98_vm0, %v71_v33 }
  0x14   :  { %1426 = vmatpush3.bf16.msra.mxu1 %v1517_v36  ;;  %1471 = vmatprep.subr.bf16.mxu0 %v1524_v59 }
  0x15   :  { %1427 = vmatprep.subr.bf16.mxu1 %v1518_v43  ;;  %1472 = vmatpush3.bf16.msra.mxu0 %v1524_v59 }
  0x16   :  { %1473 = vmatprep.subr.bf16.mxu0 %v1525_v60 }
  0x18   :  { %1428 = vmatpush3.bf16.msra.mxu1 %v1518_v43 }
  0x19   :  { %1429 = vmatprep.subr.bf16.mxu1 %v1519_v48  ;;  %1474 = vmatpush3.bf16.msra.mxu0 %v1525_v60 }
  0x1a   :  { %1398 = vmatmul.mubr.msk.bf16.gmra.mxu0 %vm98_vm0, %v64_v44  ;;  %1414 = vmatmul.mubr.msk.bf16.gmra.mxu1 %vm98_vm0, %v72_v46 }
  0x1b   :  { %1401 = vmatprep.mubr.msk.bf16.mxu0 %vm98_vm0, %v65_v45  ;;  %1417 = vmatprep.mubr.msk.bf16.mxu1 %vm98_vm0, %v73_v47 }
  0x1c   :  { %1430 = vmatpush3.bf16.msra.mxu1 %v1519_v48 }
  0x1d   :  { %1431 = vmatprep.subr.bf16.mxu1 %v1520_v55 }
  0x20   :  { %1432 = vmatpush3.bf16.msra.mxu1 %v1520_v55 }
  0x21   :  { %1433 = vmatprep.subr.bf16.mxu1 %v1521_v56 }
  0x22   :  { %1402 = vmatmul.mubr.msk.bf16.gmra.mxu0 %vm98_vm0, %v66_v53  ;;  %1418 = vmatmul.mubr.msk.bf16.gmra.mxu1 %vm98_vm0, %v74_v54 }
  0x24   :  { %1434 = vmatpush3.bf16.msra.mxu1 %v1521_v56 }
  0x25   :  { %1435 = vmatprep.subr.bf16.mxu1 %v1522_v57 }
  0x28   :  { %1436 = vmatpush3.bf16.msra.mxu1 %v1522_v57 }
  0xca   :  { %v1391_v61 = vpop.f32.mrf.mxu0  ;;  %v1846_v62 = vpop.f32.mrf.mxu1 }
  0xcb   :  { %v190_v6 = vadd.f32 %v1391_v61, %v1851_v0 }
  0xcc   :  { %v181_v63 = vpop.f32.mrf.mxu0  ;;  %v245_v1 = vpop.f32.mrf.mxu1 }
  0xcd   :  { %v182_v3 = vadd.f32 %v1851_v0, %v181_v63  ;;  %v310_v15 = vmax.f32 %v190_v6, 0.0  ;;  %v246_v51 = vadd.f32 %v1851_v0, %v245_v1 }
  0xce   :  { %v1392_v2 = vpop.f32.mrf.mxu0  ;;  %v1855_v5 = vpop.f32.mrf.mxu1 }
  0xcf   :  { %v193_v4 = vadd.f32 %v1392_v2, %v1851_v0  ;;  %v308_v12 = vmax.f32 %v182_v3, 0.0  ;;  %v324_v60 = vmax.f32 %v246_v51, 0.0 }
  0xd0   :  { %v184_v7 = vpop.f32.mrf.mxu0  ;;  %v248_v9 = vpop.f32.mrf.mxu1 }
  0xd1   :  { %v185_v8 = vadd.f32 %v1851_v0, %v184_v7  ;;  %v311_v10 = vmax.f32 %v193_v4, 0.0  ;;  %v249_v52 = vadd.f32 %v1851_v0, %v248_v9 }
  0xd2   :  { %v1395_v11 = vpop.f32.mrf.mxu0  ;;  %v1859_v14 = vpop.f32.mrf.mxu1 }
  0xd3   :  { %v309_v13 = vmax.f32 %v185_v8, 0.0  ;;  %v341_v19 = vpack.c.bf16 %v311_v10, %v310_v15  ;;  %v206_v24 = vadd.f32 %v1395_v11, %v1851_v0  ;;  %v325_v63 = vmax.f32 %v249_v52, 0.0 }
  0xd4   :  { %v197_v16 = vpop.f32.mrf.mxu0  ;;  %v261_v18 = vpop.f32.mrf.mxu1  ;;  %v254_v11 = vadd.f32 %v1846_v62, %v1851_v0  ;;  %v270_v62 = vadd.f32 %v1859_v14, %v1851_v0 }
  0xd5   :  { %v340_v17 = vpack.c.bf16 %v309_v13, %v308_v12  ;;  %v198_v21 = vadd.f32 %v1851_v0, %v197_v16  ;;  %v314_v32 = vmax.f32 %v206_v24, 0.0  ;;  %v348_v8 = vpack.c.bf16 %v325_v63, %v324_v60 }
  0xd6   :  { %v1396_v20 = vpop.f32.mrf.mxu0  ;;  %v1863_v23 = vpop.f32.mrf.mxu1  ;;  %v262_v9 = vadd.f32 %v1851_v0, %v261_v18  ;;  %v257_v13 = vadd.f32 %v1855_v5, %v1851_v0 }
  0xd7   :  { %v209_v22 = vadd.f32 %v1396_v20, %v1851_v0  ;;  %1437 = vmatprep.mubr.bf16.mxu1 %v340_v17  ;;  %v312_v30 = vmax.f32 %v198_v21, 0.0  ;;  %v273_v5 = vadd.f32 %v1863_v23, %v1851_v0 }
  0xd8   :  { %v200_v25 = vpop.f32.mrf.mxu0  ;;  %1438 = vmatmul.mubr.bf16.vlgmr.msra.gmra.mxu1 %v341_v19  ;;  %v264_v29 = vpop.f32.mrf.mxu1  ;;  %v328_v16 = vmax.f32 %v262_v9, 0.0  ;;  %v326_v19 = vmax.f32 %v254_v11, 0.0  ;;  %v327_v20 = vmax.f32 %v257_v13, 0.0 }
  0xd9   :  { %v201_v26 = vadd.f32 %v1851_v0, %v200_v25  ;;  %v315_v27 = vmax.f32 %v209_v22, 0.0  ;;  %v265_v10 = vadd.f32 %v1851_v0, %v264_v29  ;;  %v330_v29 = vmax.f32 %v270_v62, 0.0 }
  0xda   :  { %v1399_v28 = vpop.f32.mrf.mxu0  ;;  %v1867_v37 = vpop.f32.mrf.mxu1  ;;  %v349_v25 = vpack.c.bf16 %v327_v20, %v326_v19 }
  0xdb   :  { %v313_v31 = vmax.f32 %v201_v26, 0.0  ;;  %v343_v35 = vpack.c.bf16 %v315_v27, %v314_v32  ;;  %v222_v40 = vadd.f32 %v1399_v28, %v1851_v0  ;;  %v329_v17 = vmax.f32 %v265_v10, 0.0 }
  0xdc   :  { %v213_v33 = vpop.f32.mrf.mxu0  ;;  %v277_v45 = vpop.f32.mrf.mxu1  ;;  %v286_v14 = vadd.f32 %v1867_v37, %v1851_v0  ;;  %v1526_v37 = vld [vmem:[%s2442_s5] sm:$0xff]  }
  0xdd   :  { %v342_v34 = vpack.c.bf16 %v313_v31, %v312_v30  ;;  %v214_v38 = vadd.f32 %v1851_v0, %v213_v33  ;;  %v318_v48 = vmax.f32 %v222_v40, 0.0  ;;  %v350_v22 = vpack.c.bf16 %v329_v17, %v328_v16  ;;  %1475 = vmatprep.subr.bf16.mxu0 %v1526_v37 }
  0xde   :  { %v1400_v36 = vpop.f32.mrf.mxu0  ;;  %v1416_v55 = vpop.f32.mrf.mxu1  ;;  %v278_v18 = vadd.f32 %v1851_v0, %v277_v45  ;;  %v331_v30 = vmax.f32 %v273_v5, 0.0  ;;  %1476 = vmatpush3.bf16.msra.mxu0 %v1526_v37 }
  0xdf   :  { %v225_v39 = vadd.f32 %v1400_v36, %v1851_v0  ;;  %1441 = vmatprep.mubr.bf16.mxu1 %v342_v34  ;;  %v316_v46 = vmax.f32 %v214_v38, 0.0  ;;  %v289_v36 = vadd.f32 %v1416_v55, %v1851_v0 }
  0xe0   :  { %v216_v41 = vpop.f32.mrf.mxu0  ;;  %1442 = vmatmul.mubr.bf16.gmra.mxu1 %v343_v35  ;;  %v280_v1 = vpop.f32.mrf.mxu1  ;;  %v332_v27 = vmax.f32 %v278_v18, 0.0  ;;  %v351_v35 = vpack.c.bf16 %v331_v30, %v330_v29 }
  0xe1   :  { %v217_v42 = vadd.f32 %v1851_v0, %v216_v41  ;;  %v319_v43 = vmax.f32 %v225_v39, 0.0  ;;  %v281_v24 = vadd.f32 %v1851_v0, %v280_v1  ;;  %v334_v39 = vmax.f32 %v286_v14, 0.0 }
  0xe2   :  { %v1403_v44 = vpop.f32.mrf.mxu0  ;;  %v1419_v15 = vpop.f32.mrf.mxu1  ;;  %v335_v40 = vmax.f32 %v289_v36, 0.0 }
  0xe3   :  { %v317_v47 = vmax.f32 %v217_v42, 0.0  ;;  %v345_v53 = vpack.c.bf16 %v319_v43, %v318_v48  ;;  %v238_v58 = vadd.f32 %v1403_v44, %v1851_v0  ;;  %v333_v28 = vmax.f32 %v281_v24, 0.0 }
  0xe4   :  { %v229_v49 = vpop.f32.mrf.mxu0  ;;  %v293_v21 = vpop.f32.mrf.mxu1  ;;  %v353_v42 = vpack.c.bf16 %v335_v40, %v334_v39  ;;  %v302_v43 = vadd.f32 %v1419_v15, %v1851_v0 }
  0xe5   :  { %v344_v50 = vpack.c.bf16 %v317_v47, %v316_v46  ;;  %v230_v56 = vadd.f32 %v1851_v0, %v229_v49  ;;  %v322_v6 = vmax.f32 %v238_v58, 0.0  ;;  %v352_v32 = vpack.c.bf16 %v333_v28, %v332_v27 }
  0xe6   :  { %v1404_v54 = vpop.f32.mrf.mxu0  ;;  %v1420_v26 = vpop.f32.mrf.mxu1  ;;  %v294_v33 = vadd.f32 %v1851_v0, %v293_v21  ;;  %v338_v45 = vmax.f32 %v302_v43, 0.0 }
  0xe7   :  { %v241_v57 = vadd.f32 %v1404_v54, %v1851_v0  ;;  %1445 = vmatprep.mubr.bf16.mxu1 %v344_v50  ;;  %v320_v3 = vmax.f32 %v230_v56, 0.0  ;;  %v305_v44 = vadd.f32 %v1420_v26, %v1851_v0  ;;  %v1904_v50 = vld [vmem:[%s2444_s4] ss:$0 sm:$0xff] }
  0xe8   :  { %v232_v59 = vpop.f32.mrf.mxu0  ;;  %1446 = vmatmul.mubr.bf16.gmra.mxu1 %v345_v53  ;;  %v296_v31 = vpop.f32.mrf.mxu1  ;;  %v336_v23 = vmax.f32 %v294_v33, 0.0 }
  0xe9   :  { %v233_v61 = vadd.f32 %v1851_v0, %v232_v59  ;;  %v323_v2 = vmax.f32 %v241_v57, 0.0  ;;  %v297_v34 = vadd.f32 %v1851_v0, %v296_v31  ;;  %v339_v46 = vmax.f32 %v305_v44, 0.0 }
  0xeb   :  { %v321_v4 = vmax.f32 %v233_v61, 0.0  ;;  %v347_v12 = vpack.c.bf16 %v323_v2, %v322_v6  ;;  %v337_v38 = vmax.f32 %v297_v34, 0.0  ;;  %v355_v47 = vpack.c.bf16 %v339_v46, %v338_v45 }
  0xed   :  { %v346_v7 = vpack.c.bf16 %v321_v4, %v320_v3  ;;  %v354_v41 = vpack.c.bf16 %v337_v38, %v336_v23 }
  0xef   :  { %1449 = vmatprep.mubr.bf16.mxu1 %v346_v7 }
  0xf0   :  { %1450 = vmatmul.mubr.bf16.gmra.mxu1 %v347_v12 }
  0xf1   :  { %1453 = vmatprep.mubr.bf16.mxu1 %v348_v8 }
  0xf8   :  { %1454 = vmatmul.mubr.bf16.gmra.mxu1 %v349_v25 }
  0xf9   :  { %1457 = vmatprep.mubr.bf16.mxu1 %v350_v22 }
 0x100   :  { %1458 = vmatmul.mubr.bf16.gmra.mxu1 %v351_v35 }
 0x101   :  { %1461 = vmatprep.mubr.bf16.mxu1 %v352_v32 }
 0x108   :  { %1462 = vmatmul.mubr.bf16.gmra.mxu1 %v353_v42 }
 0x109   :  { %1465 = vmatprep.mubr.bf16.mxu1 %v354_v41 }
 0x110   :  { %1466 = vmatmul.mubr.bf16.gmra.mxu1 %v355_v47 }
 0x198   :  { %v1439_v48 = vpop.f32.mrf.mxu1 }
 0x199   :  { %v470_v53 = vadd.f32 %v1439_v48, %v1904_v50 }
 0x19a   :  { %v461_v49 = vpop.f32.mrf.mxu1 }
 0x19b   :  { %v462_v51 = vadd.f32 %v1904_v50, %v461_v49  ;;  %v590_v60 = vmax.f32 %v470_v53, 0.0 }
 0x19c   :  { %v1440_v0 = vpop.f32.mrf.mxu1 }
 0x19d   :  { %v473_v52 = vadd.f32 %v1440_v0, %v1904_v50  ;;  %v588_v58 = vmax.f32 %v462_v51, 0.0 }
 0x19e   :  { %v464_v54 = vpop.f32.mrf.mxu1 }
 0x19f   :  { %v465_v55 = vadd.f32 %v1904_v50, %v464_v54  ;;  %v591_v56 = vmax.f32 %v473_v52, 0.0 }
 0x1a0   :  { %v1443_v57 = vpop.f32.mrf.mxu1 }
 0x1a1   :  { %v589_v59 = vmax.f32 %v465_v55, 0.0  ;;  %v621_v2 = vpack.c.bf16 %v591_v56, %v590_v60  ;;  %v486_v6 = vadd.f32 %v1443_v57, %v1904_v50 }
 0x1a2   :  { %v477_v61 = vpop.f32.mrf.mxu1 }
 0x1a3   :  { %v620_v63 = vpack.c.bf16 %v589_v59, %v588_v58  ;;  %v478_v3 = vadd.f32 %v1904_v50, %v477_v61  ;;  %v594_v13 = vmax.f32 %v486_v6, 0.0 }
 0x1a4   :  { %v1444_v1 = vpop.f32.mrf.mxu1 }
 0x1a5   :  { %v489_v4 = vadd.f32 %v1444_v1, %v1904_v50  ;;  %1477 = vmatprep.mubr.msk.bf16.mxu0 %vm675_vm1, %v620_v63  ;;  %v592_v11 = vmax.f32 %v478_v3, 0.0 }
 0x1a6   :  { %v480_v7 = vpop.f32.mrf.mxu1  ;;  %1478 = vmatmul.mubr.msk.bf16.vlgmr.msra.gmra.mxu0 %vm675_vm1, %v621_v2 }
 0x1a7   :  { %v481_v8 = vadd.f32 %v1904_v50, %v480_v7  ;;  %v595_v9 = vmax.f32 %v489_v4, 0.0 }
 0x1a8   :  { %v1447_v10 = vpop.f32.mrf.mxu1 }
 0x1a9   :  { %v593_v12 = vmax.f32 %v481_v8, 0.0  ;;  %v623_v17 = vpack.c.bf16 %v595_v9, %v594_v13  ;;  %v502_v22 = vadd.f32 %v1447_v10, %v1904_v50 }
 0x1aa   :  { %v493_v15 = vpop.f32.mrf.mxu1 }
 0x1ab   :  { %v622_v16 = vpack.c.bf16 %v593_v12, %v592_v11  ;;  %v494_v20 = vadd.f32 %v1904_v50, %v493_v15  ;;  %v598_v27 = vmax.f32 %v502_v22, 0.0 }
 0x1ac   :  { %v1448_v19 = vpop.f32.mrf.mxu1 }
 0x1ad   :  { %v505_v21 = vadd.f32 %v1448_v19, %v1904_v50  ;;  %1481 = vmatprep.mubr.msk.bf16.mxu0 %vm675_vm1, %v622_v16  ;;  %v596_v5 = vmax.f32 %v494_v20, 0.0 }
 0x1ae   :  { %v496_v18 = vpop.f32.mrf.mxu1  ;;  %1482 = vmatmul.mubr.msk.bf16.gmra.mxu0 %vm675_vm1, %v623_v17 }
 0x1af   :  { %v497_v24 = vadd.f32 %v1904_v50, %v496_v18  ;;  %v599_v25 = vmax.f32 %v505_v21, 0.0 }
 0x1b0   :  { %v1451_v62 = vpop.f32.mrf.mxu1 }
 0x1b1   :  { %v597_v26 = vmax.f32 %v497_v24, 0.0  ;;  %v625_v30 = vpack.c.bf16 %v599_v25, %v598_v27  ;;  %v518_v34 = vadd.f32 %v1451_v62, %v1904_v50 }
 0x1b2   :  { %v509_v28 = vpop.f32.mrf.mxu1 }
 0x1b3   :  { %v624_v29 = vpack.c.bf16 %v597_v26, %v596_v5  ;;  %v510_v32 = vadd.f32 %v1904_v50, %v509_v28  ;;  %v602_v40 = vmax.f32 %v518_v34, 0.0 }
 0x1b4   :  { %v1452_v31 = vpop.f32.mrf.mxu1 }
 0x1b5   :  { %v521_v33 = vadd.f32 %v1452_v31, %v1904_v50  ;;  %1485 = vmatprep.mubr.msk.bf16.mxu0 %vm675_vm1, %v624_v29  ;;  %v600_v38 = vmax.f32 %v510_v32, 0.0 }
 0x1b6   :  { %v512_v35 = vpop.f32.mrf.mxu1  ;;  %1486 = vmatmul.mubr.msk.bf16.gmra.mxu0 %vm675_vm1, %v625_v30 }
 0x1b7   :  { %v513_v14 = vadd.f32 %v1904_v50, %v512_v35  ;;  %v603_v36 = vmax.f32 %v521_v33, 0.0 }
 0x1b8   :  { %v1455_v23 = vpop.f32.mrf.mxu1 }
 0x1b9   :  { %v601_v39 = vmax.f32 %v513_v14, 0.0  ;;  %v627_v43 = vpack.c.bf16 %v603_v36, %v602_v40  ;;  %v534_v47 = vadd.f32 %v1455_v23, %v1904_v50  ;;  %v1957_v14 = vld [vmem:[%s2445_s6] ss:$0 sm:$0xff] }
 0x1ba   :  { %v525_v41 = vpop.f32.mrf.mxu1 }
 0x1bb   :  { %v626_v42 = vpack.c.bf16 %v601_v39, %v600_v38  ;;  %v526_v45 = vadd.f32 %v1904_v50, %v525_v41  ;;  %v606_v53 = vmax.f32 %v534_v47, 0.0 }
 0x1bc   :  { %v1456_v44 = vpop.f32.mrf.mxu1 }
 0x1bd   :  { %v537_v46 = vadd.f32 %v1456_v44, %v1904_v50  ;;  %1489 = vmatprep.mubr.msk.bf16.mxu0 %vm675_vm1, %v626_v42  ;;  %v604_v51 = vmax.f32 %v526_v45, 0.0 }
 0x1be   :  { %v528_v37 = vpop.f32.mrf.mxu1  ;;  %1490 = vmatmul.mubr.msk.bf16.gmra.mxu0 %vm675_vm1, %v627_v43 }
 0x1bf   :  { %v529_v48 = vadd.f32 %v1904_v50, %v528_v37  ;;  %v607_v49 = vmax.f32 %v537_v46, 0.0 }
 0x1c0   :  { %v1459_v0 = vpop.f32.mrf.mxu1 }
 0x1c1   :  { %v605_v52 = vmax.f32 %v529_v48, 0.0  ;;  %v629_v56 = vpack.c.bf16 %v607_v49, %v606_v53  ;;  %v550_v60 = vadd.f32 %v1459_v0, %v1904_v50 }
 0x1c2   :  { %v541_v54 = vpop.f32.mrf.mxu1 }
 0x1c3   :  { %v628_v55 = vpack.c.bf16 %v605_v52, %v604_v51  ;;  %v542_v58 = vadd.f32 %v1904_v50, %v541_v54  ;;  %v610_v6 = vmax.f32 %v550_v60, 0.0 }
 0x1c4   :  { %v1460_v57 = vpop.f32.mrf.mxu1 }
 0x1c5   :  { %v553_v59 = vadd.f32 %v1460_v57, %v1904_v50  ;;  %1493 = vmatprep.mubr.msk.bf16.mxu0 %vm675_vm1, %v628_v55  ;;  %v608_v3 = vmax.f32 %v542_v58, 0.0 }
 0x1c6   :  { %v544_v61 = vpop.f32.mrf.mxu1  ;;  %1494 = vmatmul.mubr.msk.bf16.gmra.mxu0 %vm675_vm1, %v629_v56 }
 0x1c7   :  { %v545_v63 = vadd.f32 %v1904_v50, %v544_v61  ;;  %v611_v2 = vmax.f32 %v553_v59, 0.0 }
 0x1c8   :  { %v1463_v1 = vpop.f32.mrf.mxu1 }
 0x1c9   :  { %v609_v4 = vmax.f32 %v545_v63, 0.0  ;;  %v631_v9 = vpack.c.bf16 %v611_v2, %v610_v6  ;;  %v566_v13 = vadd.f32 %v1463_v1, %v1904_v50 }
 0x1ca   :  { %v557_v7 = vpop.f32.mrf.mxu1 }
 0x1cb   :  { %v630_v8 = vpack.c.bf16 %v609_v4, %v608_v3  ;;  %v558_v11 = vadd.f32 %v1904_v50, %v557_v7  ;;  %v614_v22 = vmax.f32 %v566_v13, 0.0 }
 0x1cc   :  { %v1464_v10 = vpop.f32.mrf.mxu1 }
 0x1cd   :  { %v569_v12 = vadd.f32 %v1464_v10, %v1904_v50  ;;  %1497 = vmatprep.mubr.msk.bf16.mxu0 %vm675_vm1, %v630_v8  ;;  %v612_v20 = vmax.f32 %v558_v11, 0.0 }
 0x1ce   :  { %v560_v15 = vpop.f32.mrf.mxu1  ;;  %1498 = vmatmul.mubr.msk.bf16.gmra.mxu0 %vm675_vm1, %v631_v9 }
 0x1cf   :  { %v561_v16 = vadd.f32 %v1904_v50, %v560_v15  ;;  %v615_v17 = vmax.f32 %v569_v12, 0.0 }
 0x1d0   :  { %v1467_v19 = vpop.f32.mrf.mxu1 }
 0x1d1   :  { %v613_v21 = vmax.f32 %v561_v16, 0.0  ;;  %v633_v25 = vpack.c.bf16 %v615_v17, %v614_v22  ;;  %v582_v27 = vadd.f32 %v1467_v19, %v1904_v50 }
 0x1d2   :  { %v573_v18 = vpop.f32.mrf.mxu1 }
 0x1d3   :  { %v632_v24 = vpack.c.bf16 %v613_v21, %v612_v20  ;;  %v574_v5 = vadd.f32 %v1904_v50, %v573_v18  ;;  %v618_v33 = vmax.f32 %v582_v27, 0.0 }
 0x1d4   :  { %v1468_v62 = vpop.f32.mrf.mxu1 }
 0x1d5   :  { %v585_v26 = vadd.f32 %v1468_v62, %v1904_v50  ;;  %1501 = vmatprep.mubr.msk.bf16.mxu0 %vm675_vm1, %v632_v24  ;;  %v616_v31 = vmax.f32 %v574_v5, 0.0 }
 0x1d6   :  { %v576_v28 = vpop.f32.mrf.mxu1  ;;  %1502 = vmatmul.mubr.msk.bf16.gmra.mxu0 %vm675_vm1, %v633_v25 }
 0x1d7   :  { %v577_v29 = vadd.f32 %v1904_v50, %v576_v28  ;;  %v619_v30 = vmax.f32 %v585_v26, 0.0 }
 0x1d9   :  { %v617_v32 = vmax.f32 %v577_v29, 0.0  ;;  %v635_v35 = vpack.c.bf16 %v619_v30, %v618_v33 }
 0x1db   :  { %v634_v34 = vpack.c.bf16 %v617_v32, %v616_v31 }
 0x1dd   :  { %1505 = vmatprep.mubr.msk.bf16.mxu0 %vm675_vm1, %v634_v34 }
 0x1de   :  { %1506 = vmatmul.mubr.msk.bf16.gmra.mxu0 %vm675_vm1, %v635_v35 }
 0x266   :  { %v1479_v36 = vpop.f32.mrf.mxu0 }
 0x267   :  { %v1960_v23 = vadd.f32 %v1479_v36, %v1957_v14 }
 0x268   :  { %v758_v50 = vpop.f32.mrf.mxu0 }
 0x269   :  { %v1963_v38 = vadd.f32 %v1957_v14, %v758_v50  ;;  %v892_v39 = vsel %vm885_vm2, %v1960_v23, -inf }
 0x26a   :  { %893 = vmax.xlane.f32.xlu1 %v892_v39  ;;  %v1480_v40 = vpop.f32.mrf.mxu0 }
 0x26b   :  { %v1968_v41 = vadd.f32 %v1480_v40, %v1957_v14  ;;  %v886_v42 = vsel %vm885_vm2, %v1963_v38, -inf }
 0x26c   :  { %v761_v43 = vpop.f32.mrf.mxu0  ;;  %887 = vmax.xlane.f32.xlu0 %v886_v42 }
 0x26d   :  { %v1973_v44 = vadd.f32 %v1957_v14, %v761_v43  ;;  %v895_v45 = vsel %vm885_vm2, %v1968_v41, -inf }
 0x26e   :  { %896 = vmax.xlane.f32.xlu1 %v895_v45  ;;  %v1483_v46 = vpop.f32.mrf.mxu0 }
 0x26f   :  { %v1978_v47 = vadd.f32 %v1483_v46, %v1957_v14  ;;  %v889_v37 = vsel %vm885_vm2, %v1973_v44, -inf }
 0x270   :  { %v774_v48 = vpop.f32.mrf.mxu0  ;;  %890 = vmax.xlane.f32.xlu0 %v889_v37 }
 0x271   :  { %v1983_v0 = vadd.f32 %v1957_v14, %v774_v48  ;;  %v904_v52 = vsel %vm885_vm2, %v1978_v47, -inf }
 0x272   :  { %v1484_v49 = vpop.f32.mrf.mxu0 }
 0x273   :  { %v1986_v51 = vadd.f32 %v1484_v49, %v1957_v14  ;;  %v898_v58 = vsel %vm885_vm2, %v1983_v0, -inf }
 0x274   :  { %v777_v53 = vpop.f32.mrf.mxu0  ;;  %905 = vmax.xlane.f32.xlu0 %v904_v52 }
 0x275   :  { %v1991_v54 = vadd.f32 %v1957_v14, %v777_v53  ;;  %v907_v55 = vsel %vm885_vm2, %v1986_v51, -inf }
 0x276   :  { %908 = vmax.xlane.f32.xlu1 %v907_v55  ;;  %v1487_v56 = vpop.f32.mrf.mxu0 }
 0x277   :  { %v1996_v57 = vadd.f32 %v1487_v56, %v1957_v14  ;;  %v901_v60 = vsel %vm885_vm2, %v1991_v54, -inf }
 0x278   :  { %v790_v59 = vpop.f32.mrf.mxu0  ;;  %899 = vmax.xlane.f32.xlu0 %v898_v58 }
 0x279   :  { %v2003_v63 = vadd.f32 %v1957_v14, %v790_v59  ;;  %v916_v1 = vsel %vm885_vm2, %v1996_v57, -inf }
 0x27a   :  { %v1488_v61 = vpop.f32.mrf.mxu0  ;;  %902 = vmax.xlane.f32.xlu1 %v901_v60 }
 0x27b   :  { %v2006_v2 = vadd.f32 %v1488_v61, %v1957_v14  ;;  %v910_v9 = vsel %vm885_vm2, %v2003_v63, -inf }
 0x27c   :  { %v793_v3 = vpop.f32.mrf.mxu0  ;;  %917 = vmax.xlane.f32.xlu0 %v916_v1 }
 0x27d   :  { %v2011_v4 = vadd.f32 %v1957_v14, %v793_v3  ;;  %v919_v6 = vsel %vm885_vm2, %v2006_v2, -inf }
 0x27e   :  { %v1491_v7 = vpop.f32.mrf.mxu0  ;;  %920 = vmax.xlane.f32.xlu1 %v919_v6 }
 0x27f   :  { %v2016_v8 = vadd.f32 %v1491_v7, %v1957_v14  ;;  %v913_v11 = vsel %vm885_vm2, %v2011_v4, -inf }
 0x280   :  { %v806_v10 = vpop.f32.mrf.mxu0  ;;  %911 = vmax.xlane.f32.xlu0 %v910_v9 }
 0x281   :  { %v2023_v13 = vadd.f32 %v1957_v14, %v806_v10  ;;  %v928_v16 = vsel %vm885_vm2, %v2016_v8, -inf }
 0x282   :  { %v1492_v12 = vpop.f32.mrf.mxu0  ;;  %914 = vmax.xlane.f32.xlu1 %v913_v11 }
 0x283   :  { %v2026_v15 = vadd.f32 %v1492_v12, %v1957_v14  ;;  %v922_v18 = vsel %vm885_vm2, %v2023_v13, -inf }
 0x284   :  { %v809_v17 = vpop.f32.mrf.mxu0  ;;  %929 = vmax.xlane.f32.xlu0 %v928_v16 }
 0x285   :  { %v2031_v19 = vadd.f32 %v1957_v14, %v809_v17  ;;  %v931_v20 = vsel %vm885_vm2, %v2026_v15, -inf }
 0x286   :  { %v1495_v21 = vpop.f32.mrf.mxu0  ;;  %932 = vmax.xlane.f32.xlu1 %v931_v20 }
 0x287   :  { %v2036_v22 = vadd.f32 %v1495_v21, %v1957_v14  ;;  %v925_v25 = vsel %vm885_vm2, %v2031_v19, -inf }
 0x288   :  { %v822_v24 = vpop.f32.mrf.mxu0  ;;  %923 = vmax.xlane.f32.xlu0 %v922_v18 }
 0x289   :  { %v2043_v5 = vadd.f32 %v1957_v14, %v822_v24  ;;  %v940_v27 = vsel %vm885_vm2, %v2036_v22, -inf }
 0x28a   :  { %v1496_v62 = vpop.f32.mrf.mxu0  ;;  %926 = vmax.xlane.f32.xlu1 %v925_v25 }
 0x28b   :  { %v2046_v26 = vadd.f32 %v1496_v62, %v1957_v14  ;;  %v934_v33 = vsel %vm885_vm2, %v2043_v5, -inf }
 0x28c   :  { %v825_v28 = vpop.f32.mrf.mxu0  ;;  %941 = vmax.xlane.f32.xlu0 %v940_v27 }
 0x28d   :  { %v2051_v29 = vadd.f32 %v1957_v14, %v825_v28  ;;  %v943_v30 = vsel %vm885_vm2, %v2046_v26, -inf }
 0x28e   :  { %v1499_v31 = vpop.f32.mrf.mxu0  ;;  %944 = vmax.xlane.f32.xlu1 %v943_v30 }
 0x28f   :  { %v2056_v32 = vadd.f32 %v1499_v31, %v1957_v14  ;;  %v937_v35 = vsel %vm885_vm2, %v2051_v29, -inf }
 0x290   :  { %v838_v34 = vpop.f32.mrf.mxu0  ;;  %935 = vmax.xlane.f32.xlu0 %v934_v33 }
 0x291   :  { %v2063_v50 = vadd.f32 %v1957_v14, %v838_v34  ;;  %v952_v40 = vsel %vm885_vm2, %v2056_v32, -inf }
 0x292   :  { %v1500_v36 = vpop.f32.mrf.mxu0  ;;  %938 = vmax.xlane.f32.xlu1 %v937_v35 }
 0x293   :  { %v2066_v39 = vadd.f32 %v1500_v36, %v1957_v14  ;;  %v946_v48 = vsel %vm885_vm2, %v2063_v50, -inf }
 0x294   :  { %v841_v42 = vpop.f32.mrf.mxu0  ;;  %953 = vmax.xlane.f32.xlu0 %v952_v40 }
 0x295   :  { %v2071_v43 = vadd.f32 %v1957_v14, %v841_v42  ;;  %v955_v45 = vsel %vm885_vm2, %v2066_v39, -inf }
 0x296   :  { %v1503_v46 = vpop.f32.mrf.mxu0  ;;  %956 = vmax.xlane.f32.xlu1 %v955_v45 }
 0x297   :  { %v2076_v37 = vadd.f32 %v1503_v46, %v1957_v14  ;;  %v949_v52 = vsel %vm885_vm2, %v2071_v43, -inf }
 0x298   :  { %v854_v49 = vpop.f32.mrf.mxu0  ;;  %947 = vmax.xlane.f32.xlu0 %v946_v48 }
 0x299   :  { %v2083_v55 = vadd.f32 %v1957_v14, %v854_v49  ;;  %v964_v58 = vsel %vm885_vm2, %v2076_v37, -inf }
 0x29a   :  { %v1504_v53 = vpop.f32.mrf.mxu0  ;;  %950 = vmax.xlane.f32.xlu1 %v949_v52 }
 0x29b   :  { %v2086_v56 = vadd.f32 %v1504_v53, %v1957_v14  ;;  %v958_v3 = vsel %vm885_vm2, %v2083_v55, -inf }
 0x29c   :  { %v857_v59 = vpop.f32.mrf.mxu0  ;;  %965 = vmax.xlane.f32.xlu0 %v964_v58 }
 0x29d   :  { %v2091_v60 = vadd.f32 %v1957_v14, %v857_v59  ;;  %v967_v61 = vsel %vm885_vm2, %v2086_v56, -inf }
 0x29e   :  { %v1507_v1 = vpop.f32.mrf.mxu0  ;;  %968 = vmax.xlane.f32.xlu1 %v967_v61 }
 0x29f   :  { %v961_v9 = vsel %vm885_vm2, %v2091_v60, -inf  ;;  %v2103_v11 = vadd.f32 %v1507_v1, %v1957_v14 }
 0x2a0   :  { %v870_v6 = vpop.f32.mrf.mxu0  ;;  %959 = vmax.xlane.f32.xlu0 %v958_v3 }
 0x2a1   :  { %v2098_v7 = vadd.f32 %v1957_v14, %v870_v6  ;;  %v976_v18 = vsel %vm885_vm2, %v2103_v11, -inf }
 0x2a2   :  { %v1508_v10 = vpop.f32.mrf.mxu0  ;;  %962 = vmax.xlane.f32.xlu1 %v961_v9 }
 0x2a3   :  { %v970_v12 = vsel %vm885_vm2, %v2098_v7, -inf  ;;  %v2111_v20 = vadd.f32 %v1508_v10, %v1957_v14 }
 0x2a4   :  { %v873_v16 = vpop.f32.mrf.mxu0  ;;  %971 = vmax.xlane.f32.xlu0 %v970_v12 }
 0x2a5   :  { %v2108_v17 = vadd.f32 %v1957_v14, %v873_v16  ;;  %v979_v24 = vsel %vm885_vm2, %v2111_v20, -inf }
 0x2a7   :  { %v973_v21 = vsel %vm885_vm2, %v2108_v17, -inf }
 0x2a8   :  { %974 = vmax.xlane.f32.xlu1 %v973_v21  ;;  %977 = vmax.xlane.f32.xlu0 %v976_v18 }
 0x2ac   :  { %980 = vmax.xlane.f32.xlu1 %v979_v24 }
 0x2f3   :  { %v894_v25 = vpop.xlane.xlu1 %893 }
 0x2f4   :  { %v984_v62 = vsub.f32 %v1960_v23, %v894_v25 }
 0x2f5   :  { %v888_v27 = vpop.xlane.xlu0 %887 }
 0x2f6   :  { %v1018_v28 = vmul.f32 1.442695, %v984_v62  ;;  %v982_v14 = vsub.f32 %v1963_v38, %v888_v27 }
 0x2f7   :  { %v897_v30 = vpop.xlane.xlu1 %896 }
 0x2f8   :  { %1527 = vpow2.f32 %v1018_v28  ;;  %v1014_v31 = vmul.f32 1.442695, %v982_v14  ;;  %v985_v33 = vsub.f32 %v1968_v41, %v897_v30 }
 0x2f9   :  { %v891_v34 = vpop.xlane.xlu0 %890 }
 0x2fa   :  { %1529 = vpow2.f32 %v1014_v31  ;;  %v1020_v35 = vmul.f32 1.442695, %v985_v33  ;;  %v983_v36 = vsub.f32 %v1973_v44, %v891_v34 }
 0x2fc   :  { %1531 = vpow2.f32 %v1020_v35  ;;  %v1016_v40 = vmul.f32 1.442695, %v983_v36 }
 0x2fd   :  { %v906_v42 = vpop.xlane.xlu0 %905 }
 0x2fe   :  { %1533 = vpow2.f32 %v1016_v40  ;;  %v988_v23 = vsub.f32 %v1978_v47, %v906_v42 }
 0x2ff   :  { %v909_v45 = vpop.xlane.xlu1 %908 }
 0x300   :  { %v1026_v46 = vmul.f32 1.442695, %v988_v23  ;;  %v989_v38 = vsub.f32 %v1986_v51, %v909_v45 }
 0x301   :  { %v900_v48 = vpop.xlane.xlu0 %899 }
 0x302   :  { %1535 = vpow2.f32 %v1026_v46  ;;  %v1028_v49 = vmul.f32 1.442695, %v989_v38  ;;  %v986_v41 = vsub.f32 %v1983_v0, %v900_v48 }
 0x303   :  { %v903_v52 = vpop.xlane.xlu1 %902 }
 0x304   :  { %1537 = vpow2.f32 %v1028_v49  ;;  %v1022_v53 = vmul.f32 1.442695, %v986_v41  ;;  %v987_v44 = vsub.f32 %v1991_v54, %v903_v52 }
 0x305   :  { %v2127_v58 = vpop.eup %1527  ;;  %v918_v59 = vpop.xlane.xlu0 %917 }
 0x306   :  { %1539 = vpow2.f32 %v1022_v53  ;;  %v1024_v61 = vmul.f32 1.442695, %v987_v44  ;;  %v992_v47 = vsub.f32 %v1996_v57, %v918_v59  ;;  %v1084_v51 = vsel %vm885_vm2, %v2127_v58, 0.0 }
 0x307   :  { %v2132_v1 = vpop.eup %1529  ;;  %v921_v3 = vpop.xlane.xlu1 %920  ;;  %1085 = vadd.xlane.f32.xlu0 %v1084_v51 }
 0x308   :  { %1541 = vpow2.f32 %v1024_v61  ;;  %v1034_v0 = vmul.f32 1.442695, %v992_v47  ;;  %v993_v6 = vsub.f32 %v2006_v2, %v921_v3  ;;  %v1078_v10 = vsel %vm885_vm2, %v2132_v1, 0.0 }
 0x309   :  { %v2135_v9 = vpop.eup %1531  ;;  %v912_v54 = vpop.xlane.xlu0 %911 }
 0x30a   :  { %1543 = vpow2.f32 %v1034_v0  ;;  %v1036_v12 = vmul.f32 1.442695, %v993_v6  ;;  %v990_v57 = vsub.f32 %v2003_v63, %v912_v54  ;;  %v1087_v16 = vsel %vm885_vm2, %v2135_v9, 0.0 }
 0x30b   :  { %v2142_v21 = vpop.eup %1533  ;;  %1088 = vadd.xlane.f32.xlu1 %v1087_v16  ;;  %v915_v18 = vpop.xlane.xlu1 %914  ;;  %1079 = vadd.xlane.f32.xlu0 %v1078_v10 }
 0x30c   :  { %1545 = vpow2.f32 %v1036_v12  ;;  %v1030_v2 = vmul.f32 1.442695, %v990_v57  ;;  %v991_v24 = vsub.f32 %v2011_v4, %v915_v18  ;;  %v1081_v63 = vsel %vm885_vm2, %v2142_v21, 0.0 }
 0x30d   :  { %v930_v25 = vpop.xlane.xlu0 %929 }
 0x30e   :  { %1547 = vpow2.f32 %v1030_v2  ;;  %v1032_v62 = vmul.f32 1.442695, %v991_v24  ;;  %v996_v27 = vsub.f32 %v2016_v8, %v930_v25 }
 0x30f   :  { %v2148_v28 = vpop.eup %1535  ;;  %v933_v14 = vpop.xlane.xlu1 %932  ;;  %1082 = vadd.xlane.f32.xlu1 %v1081_v63 }
 0x310   :  { %1549 = vpow2.f32 %v1032_v62  ;;  %v1042_v30 = vmul.f32 1.442695, %v996_v27  ;;  %v997_v31 = vsub.f32 %v2026_v15, %v933_v14  ;;  %v1096_v33 = vsel %vm885_vm2, %v2148_v28, 0.0 }
 0x311   :  { %v2153_v4 = vpop.eup %1537  ;;  %1097 = vadd.xlane.f32.xlu0 %v1096_v33  ;;  %v924_v34 = vpop.xlane.xlu0 %923 }
 0x312   :  { %1551 = vpow2.f32 %v1042_v30  ;;  %v1044_v8 = vmul.f32 1.442695, %v997_v31  ;;  %v994_v35 = vsub.f32 %v2023_v13, %v924_v34  ;;  %v1099_v36 = vsel %vm885_vm2, %v2153_v4, 0.0 }
 0x313   :  { %v2158_v40 = vpop.eup %1539  ;;  %v927_v42 = vpop.xlane.xlu1 %926  ;;  %1100 = vadd.xlane.f32.xlu1 %v1099_v36 }
 0x314   :  { %1553 = vpow2.f32 %v1044_v8  ;;  %v1038_v15 = vmul.f32 1.442695, %v994_v35  ;;  %v995_v23 = vsub.f32 %v2031_v19, %v927_v42  ;;  %v1090_v45 = vsel %vm885_vm2, %v2158_v40, 0.0 }
 0x315   :  { %v2163_v46 = vpop.eup %1541  ;;  %1091 = vadd.xlane.f32.xlu0 %v1090_v45  ;;  %v942_v38 = vpop.xlane.xlu0 %941 }
 0x316   :  { %1555 = vpow2.f32 %v1038_v15  ;;  %v1040_v13 = vmul.f32 1.442695, %v995_v23  ;;  %v1000_v48 = vsub.f32 %v2036_v22, %v942_v38  ;;  %v1093_v49 = vsel %vm885_vm2, %v2163_v46, 0.0 }
 0x317   :  { %v2168_v41 = vpop.eup %1543  ;;  %v945_v52 = vpop.xlane.xlu1 %944  ;;  %1094 = vadd.xlane.f32.xlu1 %v1093_v49 }
 0x318   :  { %1557 = vpow2.f32 %v1040_v13  ;;  %v1050_v19 = vmul.f32 1.442695, %v1000_v48  ;;  %v1001_v53 = vsub.f32 %v2046_v26, %v945_v52  ;;  %v1108_v44 = vsel %vm885_vm2, %v2168_v41, 0.0 }
 0x319   :  { %v2173_v59 = vpop.eup %1545  ;;  %1109 = vadd.xlane.f32.xlu0 %v1108_v44  ;;  %v936_v61 = vpop.xlane.xlu0 %935 }
 0x31a   :  { %1559 = vpow2.f32 %v1050_v19  ;;  %v1052_v22 = vmul.f32 1.442695, %v1001_v53  ;;  %v998_v47 = vsub.f32 %v2043_v5, %v936_v61  ;;  %v1111_v51 = vsel %vm885_vm2, %v2173_v59, 0.0 }
 0x31b   :  { %v2178_v3 = vpop.eup %1547  ;;  %v939_v0 = vpop.xlane.xlu1 %938  ;;  %1112 = vadd.xlane.f32.xlu1 %v1111_v51 }
 0x31c   :  { %1561 = vpow2.f32 %v1052_v22  ;;  %v1046_v26 = vmul.f32 1.442695, %v998_v47  ;;  %v999_v6 = vsub.f32 %v2051_v29, %v939_v0  ;;  %v1102_v54 = vsel %vm885_vm2, %v2178_v3, 0.0 }
 0x31d   :  { %v2183_v10 = vpop.eup %1549  ;;  %1103 = vadd.xlane.f32.xlu0 %v1102_v54  ;;  %v954_v12 = vpop.xlane.xlu0 %953 }
 0x31e   :  { %1563 = vpow2.f32 %v1046_v26  ;;  %v1048_v5 = vmul.f32 1.442695, %v999_v6  ;;  %v1004_v57 = vsub.f32 %v2056_v32, %v954_v12  ;;  %v1105_v16 = vsel %vm885_vm2, %v2183_v10, 0.0 }
 0x31f   :  { %v2188_v18 = vpop.eup %1551  ;;  %v957_v2 = vpop.xlane.xlu1 %956  ;;  %1106 = vadd.xlane.f32.xlu1 %v1105_v16 }
 0x320   :  { %1565 = vpow2.f32 %v1048_v5  ;;  %v1058_v29 = vmul.f32 1.442695, %v1004_v57  ;;  %v1005_v24 = vsub.f32 %v2066_v39, %v957_v2  ;;  %v1120_v25 = vsel %vm885_vm2, %v2188_v18, 0.0 }
 0x321   :  { %v2193_v62 = vpop.eup %1553  ;;  %1121 = vadd.xlane.f32.xlu0 %v1120_v25  ;;  %v948_v27 = vpop.xlane.xlu0 %947 }
 0x322   :  { %1567 = vpow2.f32 %v1058_v29  ;;  %v1060_v32 = vmul.f32 1.442695, %v1005_v24  ;;  %v1002_v63 = vsub.f32 %v2063_v50, %v948_v27  ;;  %v1123_v14 = vsel %vm885_vm2, %v2193_v62, 0.0 }
 0x323   :  { %v2198_v30 = vpop.eup %1555  ;;  %v951_v31 = vpop.xlane.xlu1 %950  ;;  %1124 = vadd.xlane.f32.xlu1 %v1123_v14 }
 0x324   :  { %1569 = vpow2.f32 %v1060_v32  ;;  %v1054_v39 = vmul.f32 1.442695, %v1002_v63  ;;  %v1003_v33 = vsub.f32 %v2071_v43, %v951_v31  ;;  %v1114_v34 = vsel %vm885_vm2, %v2198_v30, 0.0 }
 0x325   :  { %v2203_v8 = vpop.eup %1557  ;;  %1115 = vadd.xlane.f32.xlu0 %v1114_v34  ;;  %v966_v35 = vpop.xlane.xlu0 %965 }
 0x326   :  { %1571 = vpow2.f32 %v1054_v39  ;;  %v1056_v50 = vmul.f32 1.442695, %v1003_v33  ;;  %v1008_v36 = vsub.f32 %v2076_v37, %v966_v35  ;;  %v1117_v42 = vsel %vm885_vm2, %v2203_v8, 0.0 }
 0x327   :  { %v2208_v15 = vpop.eup %1559  ;;  %v969_v23 = vpop.xlane.xlu1 %968  ;;  %1118 = vadd.xlane.f32.xlu1 %v1117_v42 }
 0x328   :  { %1573 = vpow2.f32 %v1056_v50  ;;  %v1066_v43 = vmul.f32 1.442695, %v1008_v36  ;;  %v1009_v45 = vsub.f32 %v2086_v56, %v969_v23  ;;  %v1132_v38 = vsel %vm885_vm2, %v2208_v15, 0.0 }
 0x329   :  { %v2213_v13 = vpop.eup %1561  ;;  %1133 = vadd.xlane.f32.xlu0 %v1132_v38  ;;  %v960_v48 = vpop.xlane.xlu0 %959 }
 0x32a   :  { %1575 = vpow2.f32 %v1066_v43  ;;  %v1068_v37 = vmul.f32 1.442695, %v1009_v45  ;;  %v1006_v49 = vsub.f32 %v2083_v55, %v960_v48  ;;  %v1135_v52 = vsel %vm885_vm2, %v2213_v13, 0.0 }
 0x32b   :  { %v2218_v19 = vpop.eup %1563  ;;  %v963_v53 = vpop.xlane.xlu1 %962  ;;  %1136 = vadd.xlane.f32.xlu1 %v1135_v52 }
 0x32c   :  { %1577 = vpow2.f32 %v1068_v37  ;;  %v1062_v56 = vmul.f32 1.442695, %v1006_v49  ;;  %v1007_v44 = vsub.f32 %v2091_v60, %v963_v53  ;;  %v1126_v61 = vsel %vm885_vm2, %v2218_v19, 0.0 }
 0x32d   :  { %v2223_v22 = vpop.eup %1565  ;;  %1127 = vadd.xlane.f32.xlu0 %v1126_v61  ;;  %v972_v47 = vpop.xlane.xlu0 %971 }
 0x32e   :  { %1579 = vpow2.f32 %v1062_v56  ;;  %v1064_v55 = vmul.f32 1.442695, %v1007_v44  ;;  %v1010_v51 = vsub.f32 %v2098_v7, %v972_v47  ;;  %v1129_v0 = vsel %vm885_vm2, %v2223_v22, 0.0 }
 0x32f   :  { %v2228_v26 = vpop.eup %1567  ;;  %1130 = vadd.xlane.f32.xlu1 %v1129_v0 }
 0x330   :  { %1581 = vpow2.f32 %v1064_v55  ;;  %v1070_v6 = vmul.f32 1.442695, %v1010_v51  ;;  %v1144_v60 = vsel %vm885_vm2, %v2228_v26, 0.0 }
 0x331   :  { %v2232_v54 = vpop.eup %1569  ;;  %v975_v12 = vpop.xlane.xlu1 %974  ;;  %1145 = vadd.xlane.f32.xlu0 %v1144_v60 }
 0x332   :  { %v978_v5 = vpop.xlane.xlu0 %977  ;;  %1583 = vpow2.f32 %v1070_v6  ;;  %v1011_v57 = vsub.f32 %v2108_v17, %v975_v12  ;;  %v1147_v16 = vsel %vm885_vm2, %v2232_v54, 0.0 }
 0x333   :  { %v1012_v7 = vsub.f32 %v2103_v11, %v978_v5  ;;  %v2238_v2 = vpop.eup %1571  ;;  %1148 = vadd.xlane.f32.xlu1 %v1147_v16 }
 0x334   :  { %v1072_v29 = vmul.f32 1.442695, %v1011_v57  ;;  %v1138_v25 = vsel %vm885_vm2, %v2238_v2, 0.0 }
 0x335   :  { %v1074_v24 = vmul.f32 1.442695, %v1012_v7  ;;  %v2242_v27 = vpop.eup %1573  ;;  %v981_v32 = vpop.xlane.xlu1 %980  ;;  %1139 = vadd.xlane.f32.xlu0 %v1138_v25 }
 0x336   :  { %1585 = vpow2.f32 %v1072_v29  ;;  %v1013_v17 = vsub.f32 %v2111_v20, %v981_v32  ;;  %v1141_v11 = vsel %vm885_vm2, %v2242_v27, 0.0 }
 0x337   :  { %v2247_v63 = vpop.eup %1575  ;;  %1587 = vpow2.f32 %v1074_v24  ;;  %1142 = vadd.xlane.f32.xlu1 %v1141_v11 }
 0x338   :  { %v1076_v14 = vmul.f32 1.442695, %v1013_v17  ;;  %v1156_v31 = vsel %vm885_vm2, %v2247_v63, 0.0 }
 0x339   :  { %v2251_v39 = vpop.eup %1577  ;;  %1157 = vadd.xlane.f32.xlu0 %v1156_v31 }
 0x33a   :  { %1589 = vpow2.f32 %v1076_v14  ;;  %v1159_v33 = vsel %vm885_vm2, %v2251_v39, 0.0 }
 0x33b   :  { %v2255_v34 = vpop.eup %1579  ;;  %1160 = vadd.xlane.f32.xlu1 %v1159_v33 }
 0x33c   :  { %v1150_v20 = vsel %vm885_vm2, %v2255_v34, 0.0 }
 0x33d   :  { %v2259_v35 = vpop.eup %1581  ;;  %1151 = vadd.xlane.f32.xlu0 %v1150_v20 }
 0x33e   :  { %v1153_v50 = vsel %vm885_vm2, %v2259_v35, 0.0 }
 0x33f   :  { %v2263_v36 = vpop.eup %1583  ;;  %1154 = vadd.xlane.f32.xlu1 %v1153_v50 }
 0x340   :  { %v1162_v42 = vsel %vm885_vm2, %v2263_v36, 0.0 }
 0x341   :  { %1163 = vadd.xlane.f32.xlu0 %v1162_v42 }
 0x343   :  { %v2267_v23 = vpop.eup %1585 }
 0x344   :  { %v2269_v43 = vpop.eup %1587  ;;  %v1165_v45 = vsel %vm885_vm2, %v2267_v23, 0.0 }
 0x345   :  { %1166 = vadd.xlane.f32.xlu1 %v1165_v45  ;;  %v1168_v38 = vsel %vm885_vm2, %v2269_v43, 0.0 }
 0x346   :  { %1169 = vadd.xlane.f32.xlu0 %v1168_v38 }
 0x347   :  { %v2275_v48 = vpop.eup %1589 }
 0x348   :  { %v1171_v37 = vsel %vm885_vm2, %v2275_v48, 0.0 }
 0x349   :  { %1172 = vadd.xlane.f32.xlu1 %v1171_v37 }
 0x390   :  { %v1086_v49 = vpop.xlane.xlu0 %1085 }
 0x391   :  { %1591 = vrcp.f32 %v1086_v49 }
 0x394   :  { %v1089_v52 = vpop.xlane.xlu1 %1088  ;;  %v1080_v53 = vpop.xlane.xlu0 %1079 }
 0x395   :  { %1593 = vrcp.f32 %v1089_v52 }
 0x396   :  { %1595 = vrcp.f32 %v1080_v53 }
 0x398   :  { %v1083_v56 = vpop.xlane.xlu1 %1082 }
 0x399   :  { %1597 = vrcp.f32 %v1083_v56 }
 0x39a   :  { %v1098_v44 = vpop.xlane.xlu0 %1097 }
 0x39b   :  { %1599 = vrcp.f32 %v1098_v44 }
 0x39c   :  { %v1101_v61 = vpop.xlane.xlu1 %1100 }
 0x39d   :  { %1601 = vrcp.f32 %v1101_v61 }
 0x39e   :  { %v1592_v47 = vpop.eup %1591  ;;  %v1092_v55 = vpop.xlane.xlu0 %1091 }
 0x39f   :  { %v1179_v51 = vmul.f32 %v1592_v47, %v2127_v58  ;;  %1603 = vrcp.f32 %v1092_v55 }
 0x3a0   :  { %v1095_v0 = vpop.xlane.xlu1 %1094 }
 0x3a1   :  { %1240 = vst.msk [vmem:[%s2446_s7 + $0x10] sm:$0xff] %vm885_vm2, %v1179_v51  ;;  %1605 = vrcp.f32 %v1095_v0 }
 0x3a2   :  { %v1594_v6 = vpop.eup %1593  ;;  %v1110_v60 = vpop.xlane.xlu0 %1109 }
 0x3a3   :  { %v1596_v12 = vpop.eup %1595  ;;  %v1181_v5 = vmul.f32 %v1594_v6, %v2135_v9  ;;  %1607 = vrcp.f32 %v1110_v60 }
 0x3a4   :  { %v1175_v57 = vmul.f32 %v1596_v12, %v2132_v1  ;;  %v1113_v7 = vpop.xlane.xlu1 %1112 }
 0x3a5   :  { %1241 = vst.msk [vmem:[%s2446_s7 + $0x18] sm:$0xff] %vm885_vm2, %v1181_v5  ;;  %1609 = vrcp.f32 %v1113_v7 }
 0x3a6   :  { %v1598_v58 = vpop.eup %1597  ;;  %1238 = vst.msk [vmem:[%s2446_s7] sm:$0xff] %vm885_vm2, %v1175_v57  ;;  %v1104_v16 = vpop.xlane.xlu0 %1103 }
 0x3a7   :  { %v1177_v29 = vmul.f32 %v1598_v58, %v2142_v21  ;;  %1611 = vrcp.f32 %v1104_v16 }
 0x3a8   :  { %v1600_v9 = vpop.eup %1599  ;;  %v1107_v24 = vpop.xlane.xlu1 %1106 }
 0x3a9   :  { %1239 = vst.msk [vmem:[%s2446_s7 + $0x8] sm:$0xff] %vm885_vm2, %v1177_v29  ;;  %v1187_v1 = vmul.f32 %v1600_v9, %v2148_v28  ;;  %1613 = vrcp.f32 %v1107_v24 }
 0x3aa   :  { %v1602_v25 = vpop.eup %1601  ;;  %v1122_v32 = vpop.xlane.xlu0 %1121 }
 0x3ab   :  { %1244 = vst.msk [vmem:[%s2446_s7 + $0x30] sm:$0xff] %vm885_vm2, %v1187_v1  ;;  %v1189_v21 = vmul.f32 %v1602_v25, %v2153_v4  ;;  %1615 = vrcp.f32 %v1122_v32 }
 0x3ac   :  { %v1604_v17 = vpop.eup %1603  ;;  %v1125_v11 = vpop.xlane.xlu1 %1124 }
 0x3ad   :  { %1245 = vst.msk [vmem:[%s2446_s7 + $0x38] sm:$0xff] %vm885_vm2, %v1189_v21  ;;  %v1183_v28 = vmul.f32 %v1604_v17, %v2158_v40  ;;  %1617 = vrcp.f32 %v1125_v11 }
 0x3ae   :  { %v1606_v14 = vpop.eup %1605  ;;  %v1116_v31 = vpop.xlane.xlu0 %1115 }
 0x3af   :  { %1242 = vst.msk [vmem:[%s2446_s7 + $0x20] sm:$0xff] %vm885_vm2, %v1183_v28  ;;  %v1185_v4 = vmul.f32 %v1606_v14, %v2163_v46  ;;  %1619 = vrcp.f32 %v1116_v31 }
 0x3b0   :  { %v1608_v33 = vpop.eup %1607  ;;  %v1119_v20 = vpop.xlane.xlu1 %1118 }
 0x3b1   :  { %1243 = vst.msk [vmem:[%s2446_s7 + $0x28] sm:$0xff] %vm885_vm2, %v1185_v4  ;;  %v1195_v40 = vmul.f32 %v1608_v33, %v2168_v41  ;;  %1621 = vrcp.f32 %v1119_v20 }
 0x3b2   :  { %v1610_v50 = vpop.eup %1609  ;;  %v1134_v42 = vpop.xlane.xlu0 %1133 }
 0x3b3   :  { %1248 = vst.msk [vmem:[%s2446_s7 + $0x50] sm:$0xff] %vm885_vm2, %v1195_v40  ;;  %v1197_v46 = vmul.f32 %v1610_v50, %v2173_v59  ;;  %1623 = vrcp.f32 %v1134_v42 }
 0x3b4   :  { %v1612_v45 = vpop.eup %1611  ;;  %v1137_v38 = vpop.xlane.xlu1 %1136 }
 0x3b5   :  { %1249 = vst.msk [vmem:[%s2446_s7 + $0x58] sm:$0xff] %vm885_vm2, %v1197_v46  ;;  %v1191_v41 = vmul.f32 %v1612_v45, %v2178_v3  ;;  %1625 = vrcp.f32 %v1137_v38 }
 0x3b6   :  { %v1614_v37 = vpop.eup %1613  ;;  %v1128_v49 = vpop.xlane.xlu0 %1127 }
 0x3b7   :  { %1246 = vst.msk [vmem:[%s2446_s7 + $0x40] sm:$0xff] %vm885_vm2, %v1191_v41  ;;  %v1193_v59 = vmul.f32 %v1614_v37, %v2183_v10  ;;  %1627 = vrcp.f32 %v1128_v49 }
 0x3b8   :  { %v1616_v52 = vpop.eup %1615  ;;  %v1131_v53 = vpop.xlane.xlu1 %1130 }
 0x3b9   :  { %1247 = vst.msk [vmem:[%s2446_s7 + $0x48] sm:$0xff] %vm885_vm2, %v1193_v59  ;;  %v1203_v3 = vmul.f32 %v1616_v52, %v2188_v18  ;;  %1629 = vrcp.f32 %v1131_v53 }
 0x3ba   :  { %v1618_v56 = vpop.eup %1617  ;;  %v1146_v44 = vpop.xlane.xlu0 %1145 }
 0x3bb   :  { %1252 = vst.msk [vmem:[%s2446_s7 + $0x70] sm:$0xff] %vm885_vm2, %v1203_v3  ;;  %v1205_v10 = vmul.f32 %v1618_v56, %v2193_v62  ;;  %1631 = vrcp.f32 %v1146_v44 }
 0x3bc   :  { %v1620_v61 = vpop.eup %1619  ;;  %v1149_v47 = vpop.xlane.xlu1 %1148 }
 0x3bd   :  { %1253 = vst.msk [vmem:[%s2446_s7 + $0x78] sm:$0xff] %vm885_vm2, %v1205_v10  ;;  %v1199_v18 = vmul.f32 %v1620_v61, %v2198_v30  ;;  %1633 = vrcp.f32 %v1149_v47 }
 0x3be   :  { %v1622_v55 = vpop.eup %1621  ;;  %v1140_v51 = vpop.xlane.xlu0 %1139 }
 0x3bf   :  { %1250 = vst.msk [vmem:[%s2446_s7 + $0x60] sm:$0xff] %vm885_vm2, %v1199_v18  ;;  %v1201_v62 = vmul.f32 %v1622_v55, %v2203_v8  ;;  %1635 = vrcp.f32 %v1140_v51 }
 0x3c0   :  { %v1624_v0 = vpop.eup %1623  ;;  %v1143_v6 = vpop.xlane.xlu1 %1142 }
 0x3c1   :  { %1251 = vst.msk [vmem:[%s2446_s7 + $0x68] sm:$0xff] %vm885_vm2, %v1201_v62  ;;  %v1211_v30 = vmul.f32 %v1624_v0, %v2208_v15  ;;  %1637 = vrcp.f32 %v1143_v6 }
 0x3c2   :  { %v1626_v60 = vpop.eup %1625  ;;  %v1158_v12 = vpop.xlane.xlu0 %1157 }
 0x3c3   :  { %1256 = vst.msk [vmem:[%s2446_s7 + $0x90] sm:$0xff] %vm885_vm2, %v1211_v30  ;;  %v1213_v8 = vmul.f32 %v1626_v60, %v2213_v13  ;;  %1639 = vrcp.f32 %v1158_v12 }
 0x3c4   :  { %v1628_v5 = vpop.eup %1627  ;;  %v1161_v57 = vpop.xlane.xlu1 %1160 }
 0x3c5   :  { %1257 = vst.msk [vmem:[%s2446_s7 + $0x98] sm:$0xff] %vm885_vm2, %v1213_v8  ;;  %v1207_v15 = vmul.f32 %v1628_v5, %v2218_v19  ;;  %1641 = vrcp.f32 %v1161_v57 }
 0x3c6   :  { %v1630_v7 = vpop.eup %1629  ;;  %v1152_v58 = vpop.xlane.xlu0 %1151 }
 0x3c7   :  { %1254 = vst.msk [vmem:[%s2446_s7 + $0x80] sm:$0xff] %vm885_vm2, %v1207_v15  ;;  %v1209_v13 = vmul.f32 %v1630_v7, %v2223_v22  ;;  %1643 = vrcp.f32 %v1152_v58 }
 0x3c8   :  { %v1632_v16 = vpop.eup %1631  ;;  %v1155_v29 = vpop.xlane.xlu1 %1154 }
 0x3c9   :  { %1255 = vst.msk [vmem:[%s2446_s7 + $0x88] sm:$0xff] %vm885_vm2, %v1209_v13  ;;  %v1219_v19 = vmul.f32 %v1632_v16, %v2228_v26  ;;  %1645 = vrcp.f32 %v1155_v29 }
 0x3ca   :  { %v1634_v9 = vpop.eup %1633  ;;  %v1164_v24 = vpop.xlane.xlu0 %1163 }
 0x3cb   :  { %1260 = vst.msk [vmem:[%s2446_s7 + $0xb0] sm:$0xff] %vm885_vm2, %v1219_v19  ;;  %v1221_v22 = vmul.f32 %v1634_v9, %v2232_v54  ;;  %1647 = vrcp.f32 %v1164_v24 }
 0x3cc   :  { %v1636_v1 = vpop.eup %1635 }
 0x3cd   :  { %1261 = vst.msk [vmem:[%s2446_s7 + $0xb8] sm:$0xff] %vm885_vm2, %v1221_v22  ;;  %v1215_v25 = vmul.f32 %v1636_v1, %v2238_v2 }
 0x3ce   :  { %v1638_v26 = vpop.eup %1637  ;;  %v1167_v32 = vpop.xlane.xlu1 %1166 }
 0x3cf   :  { %1258 = vst.msk [vmem:[%s2446_s7 + $0xa0] sm:$0xff] %vm885_vm2, %v1215_v25  ;;  %v1217_v21 = vmul.f32 %v1638_v26, %v2242_v27  ;;  %1649 = vrcp.f32 %v1167_v32  ;;  %v1170_v54 = vpop.xlane.xlu0 %1169 }
 0x3d0   :  { %v1640_v17 = vpop.eup %1639  ;;  %1651 = vrcp.f32 %v1170_v54 }
 0x3d1   :  { %1259 = vst.msk [vmem:[%s2446_s7 + $0xa8] sm:$0xff] %vm885_vm2, %v1217_v21  ;;  %v1227_v2 = vmul.f32 %v1640_v17, %v2247_v63 }
 0x3d2   :  { %v1642_v11 = vpop.eup %1641  ;;  %v1173_v28 = vpop.xlane.xlu1 %1172 }
 0x3d3   :  { %1264 = vst.msk [vmem:[%s2446_s7 + $0xd0] sm:$0xff] %vm885_vm2, %v1227_v2  ;;  %v1229_v27 = vmul.f32 %v1642_v11, %v2251_v39  ;;  %1653 = vrcp.f32 %v1173_v28 }
 0x3d4   :  { %v1644_v14 = vpop.eup %1643 }
 0x3d5   :  { %1265 = vst.msk [vmem:[%s2446_s7 + $0xd8] sm:$0xff] %vm885_vm2, %v1229_v27  ;;  %v1223_v31 = vmul.f32 %v1644_v14, %v2255_v34 }
 0x3d6   :  { %v1646_v4 = vpop.eup %1645 }
 0x3d7   :  { %1262 = vst.msk [vmem:[%s2446_s7 + $0xc0] sm:$0xff] %vm885_vm2, %v1223_v31  ;;  %v1225_v63 = vmul.f32 %v1646_v4, %v2259_v35 }
 0x3d8   :  { %v1648_v33 = vpop.eup %1647 }
 0x3d9   :  { %1263 = vst.msk [vmem:[%s2446_s7 + $0xc8] sm:$0xff] %vm885_vm2, %v1225_v63  ;;  %v1231_v39 = vmul.f32 %v1648_v33, %v2263_v36 }
 0x3db   :  { %1266 = vst.msk [vmem:[%s2446_s7 + $0xe0] sm:$0xff] %vm885_vm2, %v1231_v39 }
 0x3dc   :  { %v1650_v34 = vpop.eup %1649 }
 0x3dd   :  { %v1652_v20 = vpop.eup %1651  ;;  %v1233_v40 = vmul.f32 %v1650_v34, %v2267_v23 }
 0x3de   :  { %v1235_v50 = vmul.f32 %v1652_v20, %v2269_v43 }
 0x3df   :  { %1267 = vst.msk [vmem:[%s2446_s7 + $0xe8] sm:$0xff] %vm885_vm2, %v1233_v40 }
 0x3e0   :  { %v1654_v35 = vpop.eup %1653  ;;  %1268 = vst.msk [vmem:[%s2446_s7 + $0xf0] sm:$0xff] %vm885_vm2, %v1235_v50 }
 0x3e1   :  { %v1237_v36 = vmul.f32 %v1654_v35, %v2275_v48 }
 0x3e3   :  { %1269 = vst.msk [vmem:[%s2446_s7 + $0xf8] sm:$0xff] %vm885_vm2, %v1237_v36 }

</bundles_post_ra>
